<compile_context>
chip_gen: v5e
topology: v5e:2x2
jax: 0.10.0
libtpu: 0.0.40
codegen_flags: <defaults>
</compile_context>

<pallas_src>
import jax
import jax.numpy as jnp
from jax import lax
from jax.experimental import pallas as pl
from jax.experimental.pallas import tpu as pltpu

EPS = 1e-5


def _conv_bn_kernel(x_ref, p_ref, o_ref, sum_ref, ssq_ref):
    """Fused depthwise conv1d + training-mode BatchNorm1d (NCL layout).

    grid = (2, N): axis 0 = phase (0: batch stats, 1: normalize + store),
                   axis 1 = batch row.

    x_ref:   (1, C, L)      one batch row; C on sublanes, L on lanes
    p_ref:   (C, K + 2)     packed per-channel params [w_0..w_{K-1}, gamma, beta]
    o_ref:   (1, C, L_out)  output row (lane-dense along L_out)
    sum_ref: (1, C, 1)      f32 scratch: per-channel running sum of conv output
    ssq_ref: (1, C, 1)      f32 scratch: per-channel running sum of squares
    """
    phase = pl.program_id(0)
    row = pl.program_id(1)
    _, c, l_out = o_ref.shape
    k_size = p_ref.shape[1] - 2

    p = p_ref[...].astype(jnp.float32)                       # (C, K+2)

    # Depthwise conv for this row: K static lane-offset windows of the x block
    # times per-channel weight columns (sublane-resident, broadcast along
    # lanes).  Conv bias is omitted: it cancels exactly under the BN mean
    # subtraction.  K is tiny -> fully unrolled VPU FMAs.
    acc = x_ref[:, :, 0:l_out].astype(jnp.float32) * p[:, 0:1]
    for k in range(1, k_size):
        xk = x_ref[:, :, k:k + l_out].astype(jnp.float32)
        acc = acc + xk * p[:, k:k + 1]                        # (1, C, L_out)

    @pl.when((phase == 0) & (row == 0))
    def _init():
        sum_ref[...] = jnp.zeros_like(sum_ref)
        ssq_ref[...] = jnp.zeros_like(ssq_ref)

    @pl.when(phase == 0)
    def _stats():
        # Per-channel partials; the lane reduction (axis=-1) runs on the XLU.
        sum_ref[...] += jnp.sum(acc, axis=(0, 2), keepdims=True)
        ssq_ref[...] += jnp.sum(acc * acc, axis=(0, 2), keepdims=True)

    @pl.when(phase == 1)
    def _apply():
        # Biased batch stats over (N, L_out) per channel (PyTorch training BN).
        total = pl.num_programs(1) * l_out
        inv_n = 1.0 / total
        mean = sum_ref[...] * inv_n                           # (1, C, 1)
        var = jnp.maximum(ssq_ref[...] * inv_n - mean * mean, 0.0)
        inv_std = lax.rsqrt(var + EPS)
        scale = p[:, k_size:k_size + 1] * inv_std             # gamma * inv_std
        shift = p[:, k_size + 1:k_size + 2] - mean * scale    # beta - mean*scale
        o_ref[...] = (acc * scale + shift).astype(o_ref.dtype)  # one FMA/element


@jax.jit
def conv_bn(x, w, b, gamma, beta):
    """x: (N, C, L) NCL; w: (C, K) depthwise weights; b/gamma/beta: (C,).

    Returns BatchNorm1d(training)(Conv1d(C, C, K, groups=C)(x)), shape
    (N, C, L - K + 1).  `b` is accepted for interface parity but cancels
    exactly under the BN mean subtraction, so it never enters the math.
    """
    del b  # cancels exactly under training-mode BN mean subtraction
    n, c, l = x.shape
    k = w.shape[1]
    l_out = l - k + 1

    # One packed per-channel param tile: columns [w_0 .. w_{K-1}, gamma, beta].
    params = jnp.concatenate(
        [w, gamma[:, None], beta[:, None]], axis=1).astype(jnp.float32)

    grid = (2, n)                                             # (phase, batch row)

    itemsize = jnp.dtype(x.dtype).itemsize
    cost = pl.CostEstimate(
        flops=n * c * l_out * (4 * k + 8),                    # conv x2 passes + BN
        transcendentals=c,                                    # one rsqrt per channel
        bytes_accessed=itemsize * (2 * n * c * l + n * c * l_out)
        + 4 * c * (k + 2),
    )

    return pl.pallas_call(
        _conv_bn_kernel,
        out_shape=jax.ShapeDtypeStruct((n, c, l_out), x.dtype),
        grid_spec=pltpu.PrefetchScalarGridSpec(
            num_scalar_prefetch=0,
            grid=grid,
            in_specs=[
                # One batch row per step; C x L is the (sublane, lane) tile.
                pl.BlockSpec((1, c, l), lambda p, r: (r, 0, 0)),
                # Tiny packed params: constant index -> single DMA, resident.
                pl.BlockSpec((c, k + 2), lambda p, r: (0, 0)),
            ],
            # Phase 0 pins the output index to block 0 -> no writebacks during
            # the stats phase; phase 1 walks the batch rows and writes each
            # lane-dense (C, L_out) row exactly once.
            out_specs=pl.BlockSpec((1, c, l_out), lambda p, r: (p * r, 0, 0)),
            scratch_shapes=[
                pltpu.VMEM((1, c, 1), jnp.float32),           # per-channel sum
                pltpu.VMEM((1, c, 1), jnp.float32),           # per-channel sum sq
            ],
        ),
        compiler_params=pltpu.CompilerParams(
            # Both axes are sequential: phase 1 needs phase 0's global stats
            # and rows accumulate into shared scratch.  (On v7x this runs on a
            # single TensorCore -- documented trade-off for small C.)
            dimension_semantics=("arbitrary", "arbitrary"),
        ),
        cost_estimate=cost,
    )(x, params)


def reference(x, w, b, gamma, beta):
    """Pure-JAX reference (NCL layout, centered two-pass stats)."""
    n, c, l = x.shape
    k = w.shape[1]
    l_out = l - k + 1
    y = jnp.zeros((n, c, l_out), jnp.float32)
    for kk in range(k):
        y = y + x[:, :, kk:kk + l_out].astype(jnp.float32) * w[:, kk][None, :, None]
    y = y + b[None, :, None]
    mean = jnp.mean(y, axis=(0, 2), keepdims=True)
    var = jnp.mean((y - mean) ** 2, axis=(0, 2), keepdims=True)
    return (gamma[None, :, None] * (y - mean) / jnp.sqrt(var + EPS)
            + beta[None, :, None])


if __name__ == "__main__":
    key = jax.random.PRNGKey(0)
    kw, kb, k1, k2 = jax.random.split(key, 4)

    C, K = 3, 3   # Conv1d(3, 3, 3, groups=3): depthwise; C and K fixed by the module

    # Deterministic parameter init (PyTorch-style uniform bound for conv).
    bound = (1.0 / (1 * K)) ** 0.5          # fan_in per group = (in_ch/groups) * K
    w = jax.random.uniform(kw, (C, K), minval=-bound, maxval=bound, dtype=jnp.float32)
    b = jax.random.uniform(kb, (C,), minval=-bound, maxval=bound, dtype=jnp.float32)
    gamma = jnp.ones((C,), jnp.float32)     # BatchNorm1d default weight
    beta = jnp.zeros((C,), jnp.float32)     # BatchNorm1d default bias

    # Case 1: the module's own shape (N=1, C=3, L=6) -> grid (2, 1).
    x1 = jax.random.normal(k1, (1, C, 6), dtype=jnp.float32)
    out1 = jax.block_until_ready(conv_bn(x1, w, b, gamma, beta))
    ref1 = reference(x1, w, b, gamma, beta)
    assert out1.shape == (1, C, 4)
    assert jnp.allclose(out1, ref1, atol=1e-4, rtol=1e-4), "case 1 mismatch vs reference"

    # Case 2: lane-dense, multi-row path (N=4, L_out=128) -> grid (2, 4),
    # exercises the scratch-accumulated batch statistics across grid steps.
    x2 = jax.random.normal(k2, (4, C, 130), dtype=jnp.float32)
    out2 = jax.block_until_ready(conv_bn(x2, w, b, gamma, beta))
    ref2 = reference(x2, w, b, gamma, beta)
    assert out2.shape == (4, C, 128)
    assert jnp.allclose(out2, ref2, atol=1e-4, rtol=1e-4), "case 2 mismatch vs reference"

    print("KERNEL_OK")
</pallas_src>

<mosaic_0001>
module attributes {stable_mosaic.version = 11 : i64} {
  func.func @_conv_bn_kernel(%arg0: i32, %arg1: i32, %arg2: memref<1x3x6xf32, #tpu.memory_space<vmem>>, %arg3: memref<3x5xf32, #tpu.memory_space<vmem>>, %arg4: memref<1x3x4xf32, #tpu.memory_space<vmem>>, %arg5: memref<1x3x1xf32, #tpu.memory_space<vmem>>, %arg6: memref<1x3x1xf32, #tpu.memory_space<vmem>>) attributes {dimension_semantics = [#tpu.dimension_semantics<arbitrary>, #tpu.dimension_semantics<arbitrary>], iteration_bounds = array<i64: 2, 1>, scalar_prefetch = 0 : i64, scratch_operands = 2 : i64, tpu.core_type = #tpu.core_type<tc>, window_params = [{transform_indices = @transform_0, window_bounds = array<i64: 1, 3, 6>}, {pipeline_mode = #tpu.pipeline_mode<synchronous>, transform_indices = @transform_1, window_bounds = array<i64: 3, 5>}, {transform_indices = @transform_2, window_bounds = array<i64: 1, 3, 4>}]} {
    %c0 = arith.constant 0 : index
    %c0_0 = arith.constant 0 : index
    %0 = vector.load %arg3[%c0, %c0_0] : memref<3x5xf32, #tpu.memory_space<vmem>>, vector<3x5xf32>
    %c0_1 = arith.constant 0 : index
    %c0_2 = arith.constant 0 : index
    %c0_3 = arith.constant 0 : index
    %1 = vector.load %arg2[%c0_1, %c0_2, %c0_3] : memref<1x3x6xf32, #tpu.memory_space<vmem>>, vector<1x3x4xf32>
    %2 = vector.extract_strided_slice %0 {offsets = [0, 0], sizes = [3, 1], strides = [1, 1]} : vector<3x5xf32> to vector<3x1xf32>
    %3 = vector.shape_cast %2 : vector<3x1xf32> to vector<1x3x1xf32>
    %4 = vector.broadcast %3 : vector<1x3x1xf32> to vector<1x3x4xf32>
    %5 = arith.mulf %1, %4 : vector<1x3x4xf32>
    %c0_4 = arith.constant 0 : index
    %c0_5 = arith.constant 0 : index
    %c1 = arith.constant 1 : index
    %6 = vector.load %arg2[%c0_4, %c0_5, %c1] : memref<1x3x6xf32, #tpu.memory_space<vmem>>, vector<1x3x4xf32>
    %7 = vector.extract_strided_slice %0 {offsets = [0, 1], sizes = [3, 1], strides = [1, 1]} : vector<3x5xf32> to vector<3x1xf32>
    %8 = vector.shape_cast %7 : vector<3x1xf32> to vector<1x3x1xf32>
    %9 = vector.broadcast %8 : vector<1x3x1xf32> to vector<1x3x4xf32>
    %10 = arith.mulf %6, %9 : vector<1x3x4xf32>
    %11 = arith.addf %5, %10 : vector<1x3x4xf32>
    %c0_6 = arith.constant 0 : index
    %c0_7 = arith.constant 0 : index
    %c2 = arith.constant 2 : index
    %12 = vector.load %arg2[%c0_6, %c0_7, %c2] : memref<1x3x6xf32, #tpu.memory_space<vmem>>, vector<1x3x4xf32>
    %13 = vector.extract_strided_slice %0 {offsets = [0, 2], sizes = [3, 1], strides = [1, 1]} : vector<3x5xf32> to vector<3x1xf32>
    %14 = vector.shape_cast %13 : vector<3x1xf32> to vector<1x3x1xf32>
    %15 = vector.broadcast %14 : vector<1x3x1xf32> to vector<1x3x4xf32>
    %16 = arith.mulf %12, %15 : vector<1x3x4xf32>
    %17 = arith.addf %11, %16 : vector<1x3x4xf32>
    %c0_i32 = arith.constant 0 : i32
    %18 = arith.cmpi eq, %arg0, %c0_i32 : i32
    %c0_i32_8 = arith.constant 0 : i32
    %19 = arith.cmpi eq, %arg1, %c0_i32_8 : i32
    %20 = arith.andi %18, %19 : i1
    %21 = arith.extui %20 : i1 to i32
    %c0_i32_9 = arith.constant 0 : i32
    %22 = arith.cmpi ne, %21, %c0_i32_9 : i32
    scf.if %22 {
      %cst = arith.constant 0.000000e+00 : f32
      %29 = vector.broadcast %cst : f32 to vector<1x3x1xf32>
      %c0_13 = arith.constant 0 : index
      %c0_14 = arith.constant 0 : index
      %c0_15 = arith.constant 0 : index
      %30 = vector.load %arg5[%c0_13, %c0_14, %c0_15] : memref<1x3x1xf32, #tpu.memory_space<vmem>>, vector<1x3x1xf32>
      tpu.vector_store %arg5[%c0_13, %c0_14, %c0_15], %29 {strides = array<i32>} : memref<1x3x1xf32, #tpu.memory_space<vmem>>, vector<1x3x1xf32>,
      %cst_16 = arith.constant 0.000000e+00 : f32
      %31 = vector.broadcast %cst_16 : f32 to vector<1x3x1xf32>
      %c0_17 = arith.constant 0 : index
      %c0_18 = arith.constant 0 : index
      %c0_19 = arith.constant 0 : index
      %32 = vector.load %arg6[%c0_17, %c0_18, %c0_19] : memref<1x3x1xf32, #tpu.memory_space<vmem>>, vector<1x3x1xf32>
      tpu.vector_store %arg6[%c0_17, %c0_18, %c0_19], %31 {strides = array<i32>} : memref<1x3x1xf32, #tpu.memory_space<vmem>>, vector<1x3x1xf32>,
    } else {
    }
    %c0_i32_10 = arith.constant 0 : i32
    %23 = arith.cmpi eq, %arg0, %c0_i32_10 : i32
    %24 = arith.extui %23 : i1 to i32
    %c0_i32_11 = arith.constant 0 : i32
    %25 = arith.cmpi ne, %24, %c0_i32_11 : i32
    scf.if %25 {
      %c0_13 = arith.constant 0 : index
      %c0_14 = arith.constant 0 : index
      %c0_15 = arith.constant 0 : index
      %29 = vector.load %arg5[%c0_13, %c0_14, %c0_15] : memref<1x3x1xf32, #tpu.memory_space<vmem>>, vector<1x3x1xf32>
      %cst = arith.constant dense<0.000000e+00> : vector<3xf32>
      %30 = vector.multi_reduction <add>, %17, %cst [0, 2] : vector<1x3x4xf32> to vector<3xf32>
      %31 = vector.shape_cast %30 : vector<3xf32> to vector<1x3x1xf32>
      %32 = arith.addf %29, %31 : vector<1x3x1xf32>
      %c0_16 = arith.constant 0 : index
      %c0_17 = arith.constant 0 : index
      %c0_18 = arith.constant 0 : index
      %33 = vector.load %arg5[%c0_16, %c0_17, %c0_18] : memref<1x3x1xf32, #tpu.memory_space<vmem>>, vector<1x3x1xf32>
      tpu.vector_store %arg5[%c0_16, %c0_17, %c0_18], %32 {strides = array<i32>} : memref<1x3x1xf32, #tpu.memory_space<vmem>>, vector<1x3x1xf32>,
      %c0_19 = arith.constant 0 : index
      %c0_20 = arith.constant 0 : index
      %c0_21 = arith.constant 0 : index
      %34 = vector.load %arg6[%c0_19, %c0_20, %c0_21] : memref<1x3x1xf32, #tpu.memory_space<vmem>>, vector<1x3x1xf32>
      %35 = arith.mulf %17, %17 : vector<1x3x4xf32>
      %cst_22 = arith.constant dense<0.000000e+00> : vector<3xf32>
      %36 = vector.multi_reduction <add>, %35, %cst_22 [0, 2] : vector<1x3x4xf32> to vector<3xf32>
      %37 = vector.shape_cast %36 : vector<3xf32> to vector<1x3x1xf32>
      %38 = arith.addf %34, %37 : vector<1x3x1xf32>
      %c0_23 = arith.constant 0 : index
      %c0_24 = arith.constant 0 : index
      %c0_25 = arith.constant 0 : index
      %39 = vector.load %arg6[%c0_23, %c0_24, %c0_25] : memref<1x3x1xf32, #tpu.memory_space<vmem>>, vector<1x3x1xf32>
      tpu.vector_store %arg6[%c0_23, %c0_24, %c0_25], %38 {strides = array<i32>} : memref<1x3x1xf32, #tpu.memory_space<vmem>>, vector<1x3x1xf32>,
    } else {
    }
    %c1_i32 = arith.constant 1 : i32
    %26 = arith.cmpi eq, %arg0, %c1_i32 : i32
    %27 = arith.extui %26 : i1 to i32
    %c0_i32_12 = arith.constant 0 : i32
    %28 = arith.cmpi ne, %27, %c0_i32_12 : i32
    scf.if %28 {
      %c0_13 = arith.constant 0 : index
      %c0_14 = arith.constant 0 : index
      %c0_15 = arith.constant 0 : index
      %29 = vector.load %arg5[%c0_13, %c0_14, %c0_15] : memref<1x3x1xf32, #tpu.memory_space<vmem>>, vector<1x3x1xf32>
      %cst = arith.constant 2.500000e-01 : f32
      %30 = vector.broadcast %cst : f32 to vector<1x3x1xf32>
      %31 = arith.mulf %29, %30 : vector<1x3x1xf32>
      %c0_16 = arith.constant 0 : index
      %c0_17 = arith.constant 0 : index
      %c0_18 = arith.constant 0 : index
      %32 = vector.load %arg6[%c0_16, %c0_17, %c0_18] : memref<1x3x1xf32, #tpu.memory_space<vmem>>, vector<1x3x1xf32>
      %cst_19 = arith.constant 2.500000e-01 : f32
      %33 = vector.broadcast %cst_19 : f32 to vector<1x3x1xf32>
      %34 = arith.mulf %32, %33 : vector<1x3x1xf32>
      %35 = arith.mulf %31, %31 : vector<1x3x1xf32>
      %36 = arith.subf %34, %35 : vector<1x3x1xf32>
      %cst_20 = arith.constant 0.000000e+00 : f32
      %37 = vector.broadcast %cst_20 : f32 to vector<1x3x1xf32>
      %38 = arith.maximumf %36, %37 : vector<1x3x1xf32>
      %cst_21 = arith.constant 9.99999974E-6 : f32
      %39 = vector.broadcast %cst_21 : f32 to vector<1x3x1xf32>
      %40 = arith.addf %38, %39 : vector<1x3x1xf32>
      %41 = math.rsqrt %40 : vector<1x3x1xf32>
      %42 = vector.extract_strided_slice %0 {offsets = [0, 3], sizes = [3, 1], strides = [1, 1]} : vector<3x5xf32> to vector<3x1xf32>
      %43 = vector.shape_cast %42 : vector<3x1xf32> to vector<1x3x1xf32>
      %44 = arith.mulf %43, %41 : vector<1x3x1xf32>
      %45 = vector.extract_strided_slice %0 {offsets = [0, 4], sizes = [3, 1], strides = [1, 1]} : vector<3x5xf32> to vector<3x1xf32>
      %46 = arith.mulf %31, %44 : vector<1x3x1xf32>
      %47 = vector.shape_cast %45 : vector<3x1xf32> to vector<1x3x1xf32>
      %48 = arith.subf %47, %46 : vector<1x3x1xf32>
      %49 = vector.broadcast %44 : vector<1x3x1xf32> to vector<1x3x4xf32>
      %50 = arith.mulf %17, %49 : vector<1x3x4xf32>
      %51 = vector.broadcast %48 : vector<1x3x1xf32> to vector<1x3x4xf32>
      %52 = arith.addf %50, %51 : vector<1x3x4xf32>
      %c0_22 = arith.constant 0 : index
      %c0_23 = arith.constant 0 : index
      %c0_24 = arith.constant 0 : index
      %53 = vector.load %arg4[%c0_22, %c0_23, %c0_24] : memref<1x3x4xf32, #tpu.memory_space<vmem>>, vector<1x3x4xf32>
      tpu.vector_store %arg4[%c0_22, %c0_23, %c0_24], %52 {strides = array<i32>} : memref<1x3x4xf32, #tpu.memory_space<vmem>>, vector<1x3x4xf32>,
    } else {
    }
    return
  }
  func.func @transform_0(%arg0: i32, %arg1: i32) -> (i32, i32, i32) {
    %c0_i32 = arith.constant 0 : i32
    %c0_i32_0 = arith.constant 0 : i32
    %c0_i32_1 = arith.constant 0 : i32
    return %arg1, %c0_i32, %c0_i32_0 : i32, i32, i32
  }
  func.func @transform_1(%arg0: i32, %arg1: i32) -> (i32, i32) {
    %c0_i32 = arith.constant 0 : i32
    %c0_i32_0 = arith.constant 0 : i32
    %c0_i32_1 = arith.constant 0 : i32
    return %c0_i32, %c0_i32_0 : i32, i32
  }
  func.func @transform_2(%arg0: i32, %arg1: i32) -> (i32, i32, i32) {
    %0 = arith.muli %arg0, %arg1 : i32
    %c0_i32 = arith.constant 0 : i32
    %c0_i32_0 = arith.constant 0 : i32
    %c0_i32_1 = arith.constant 0 : i32
    return %0, %c0_i32, %c0_i32_0 : i32, i32, i32
  }
}

</mosaic_0001>

<bundles_post_ra>
// kernel: conv_bn.1
= control target key start
LH: loop header
LB: loop body
LE: loop exit
PB: predicated region body
PF: predicated region fallthrough
CT: control target
= control target key end

     0   :  { %s435_s9 = smov 0   ;;  %s437_s10 = smov 0   ;;  %s491_s0 = inlined_call_operand.vmem [shape: f32[1,3,6], index: 0, kind: input, shape index: {}]   ;;  %s492_s1 = inlined_call_operand.vmem [shape: f32[3,5], index: 1, kind: input, shape index: {}]   ;;  %s493_s2 = inlined_call_operand.vmem [shape: f32[1,3,4], index: 2, kind: output, shape index: {}]  }
   0x1   :  { %s439_s11 = smov 0  }
   0x2 LB: > { %s24_s12 = sadd.s32 1, %s403_s10  ;;  %p333_p0 = scmp.ge.s32.totalorder %s407_s11, 1  ;;  %s407_s11 = sphi %s439_s11, %s12_s11   ;;  %s403_s10 = sphi %s437_s10, %s495_s10   ;;  %s399_s9 = sphi %s435_s9, %s494_s9  }
   0x3   : > { %p26_p1 = scmp.ge.s32.totalorder %s24_s12, 2  ;;  %p125_p2 = scmp.lt.s32.totalorder %s407_s11, 3 }
   0x5   : > { %s497_s12 = smov (%p26_p1, %s24_s12), 0  ;;  %p126_p3 = pnand %p333_p0, %p125_p2 }
   0x6   : > { %p184_p4 = scmp.eq.s32.totalorder (!%p126_p3), %s399_s9, 0  ;;  %s412_s17 = smov (!%p126_p3), 127  }
   0x7   : > { %129 = sbr.rel (%p126_p3) target bundleno = 866 (0x362), region = 28  ;;  %s413_s18 = smov (!%p126_p3), 126  }
   0xc   : > { %v458_v0 = vld [vmem:[%s492_s1] sm:$0x7]  ;;  %v409_v1 = vmov 1   ;;  %v410_v2 = vmov 0   ;;  %v411_v3 = vmov 2   ;;  %vm190_vm0 = vcmask (%p184_p4), 2048  }
   0xd   : > { %377 = vset.pattern.permute.xlu0 %v409_v1  ;;  %379 = vset.pattern.permute.xlu1 %v410_v2  ;;  %v157_v4 = vld [vmem:[%s491_s0] sm:$0x7]  ;;  %v414_v15 = vmov (%p184_p4), 0.0  }
   0xe   : > { %165 = vperm.xlu0 %377, %v458_v0   ;;  %160 = vperm.xlu1 %379, %v458_v0   ;;  %191 = vst.msk [vmem:[#allocation2] sm:$0x7] (%p184_p4), %vm190_vm0, %v414_v15 }
   0xf   : > { %192 = vst.msk [vmem:[#allocation3] sm:$0x7] (%p184_p4), %vm190_vm0, %v414_v15 }
  0x16   : > { %378 = vset.pattern.permute.xlu0 %v411_v3 }
  0x17   : > { %175 = vperm.xlu0 %378, %v458_v0  }
  0x80   : > { %v166_v5 = vpop.permute.xlu0 %165  ;;  %v161_v9 = vpop.permute.xlu1 %160 }
  0x81   : > { %v168_v6 = vmul.f32 %v166_v5, %v157_v4  ;;  %v163_v10 = vmul.f32 %v161_v9, %v157_v4 }
  0x83   : > { %170 = vrot.lane.b32.xlu1 %v168_v6, %s412_s17 }
  0x89   : > { %v176_v7 = vpop.permute.xlu0 %175 }
  0x8a   : > { %v178_v8 = vmul.f32 %v176_v7, %v157_v4 }
  0x8c   : > { %180 = vrot.lane.b32.xlu2 %v178_v8, %s413_s18 }
  0xe6   : > { %v181_v12 = vpop.permute.xlu2 %180 }
  0xf4   : > { %189 = sbr.rel (!%p184_p4) target bundleno = 249 (0xf9), region = 32 }
  0xf5   : > { %v171_v11 = vpop.permute.xlu1 %170 }
  0xf6   : > { %v173_v13 = vadd.f32 %v171_v11, %v163_v10 }
  0xf8   : > { %v467_v14 = vadd.f32 %v181_v12, %v173_v13 }
  0xf9 PF: > { %p335_p5 = scmp.ne.s32.totalorder %s399_s9, 0 }
  0xfb   : > { %195 = sbr.rel (%p335_p5) target bundleno = 385 (0x181), region = 36 }
 0x100   : > { %vm197_vm1 = vcmask 26624   ;;  %v205_v17 = vmul.f32 %v467_v14, %v467_v14  ;;  %v196_v19 = vld [vmem:[#allocation2] sm:$0x7]  ;;  %vm202_vm2 = vcmask 2048   ;;  %v204_v22 = vld [vmem:[#allocation3] sm:$0x7] }
 0x101   : > { %v198_v16 = vsel %vm197_vm1, %v467_v14, 0.0 }
 0x102   : > { %199 = vadd.xlane.f32.xlu0 %v198_v16  ;;  %v206_v18 = vsel %vm197_vm1, %v205_v17, 0.0 }
 0x10a   : > { %207 = vadd.xlane.f32.xlu0 %v206_v18 }
 0x175   : > { %v200_v20 = vpop.xlane.xlu0 %199 }
 0x176   : > { %v201_v21 = vadd.f32 %v200_v20, %v196_v19 }
 0x178   : > { %203 = vst.msk [vmem:[#allocation2] sm:$0x7] %vm202_vm2, %v201_v21 }
 0x17d   : > { %v208_v23 = vpop.xlane.xlu0 %207 }
 0x17e   : > { %v209_v24 = vadd.f32 %v208_v23, %v204_v22 }
 0x180   : > { %210 = vst.msk [vmem:[#allocation3] sm:$0x7] %vm202_vm2, %v209_v24 }
 0x181 PF: > { %p336_p6 = scmp.ne.s32.totalorder %s399_s9, 1 }
 0x182   : > { %s415_s19 = smov (!%p336_p6), 3   ;;  %s416_s20 = smov (!%p336_p6), 125  }
 0x183   : > { %214 = sbr.rel (%p336_p6) target bundleno = 866 (0x362), region = 40  ;;  %s418_s21 = smov (!%p336_p6), 4  }
 0x188   : > { %v215_v25 = vld [vmem:[#allocation2] sm:$0x7]  ;;  %v217_v26 = vld [vmem:[#allocation3] sm:$0x7]  ;;  %v417_v42 = vmov 3   ;;  %v419_v45 = vmov 4  }
 0x189   : > { %v216_v27 = vmul.f32 0.25, %v215_v25  ;;  %v218_v28 = vmul.f32 0.25, %v217_v26  ;;  %380 = vset.pattern.permute.xlu1 %v417_v42  ;;  %381 = vset.pattern.permute.xlu2 %v419_v45  ;;  %vm259_vm6 = vcmask 26624  }
 0x18a   : > { %382 = vset.pattern.permute.xlu0 %v419_v45 }
 0x18b   : > { %v219_v29 = vmul.f32 %v216_v27, %v216_v27 }
 0x18d   : > { %v220_v30 = vsub.f32 %v218_v28, %v219_v29 }
 0x18f   : > { %v221_v31 = vmax.f32 %v220_v30, 0.0 }
 0x191   : > { %v222_v32 = vadd.f32 1e-05, %v221_v31 }
 0x193   : > { %383 = vrsqrt.f32 %v222_v32  ;;  %vm229_vm3 = vweird.f32 %v222_v32 }
 0x199   : > { %v384_v33 = vpop.eup %383 }
 0x19a   : > { %v224_v34 = vmul.f32 %v384_v33, %v222_v32  ;;  %vm230_vm4 = vweird.f32 %v384_v33 }
 0x19b   : > { %vm231_vm5 = vmor %vm229_vm3, %vm230_vm4 }
 0x19c   : > { %v225_v35 = vmul.f32 %v384_v33, %v224_v34 }
 0x19e   : > { %v226_v36 = vmul.f32 0.5, %v225_v35 }
 0x1a0   : > { %v227_v37 = vsub.f32 1.5, %v226_v36 }
 0x1a2   : > { %v228_v38 = vmul.f32 %v384_v33, %v227_v37 }
 0x1a4   : > { %v232_v39 = vsel %vm231_vm5, %v384_v33, %v228_v38 }
 0x1a5   : > { %234 = vrot.lane.b32.xlu0 %v232_v39, %s415_s19 }
 0x217   : > { %v235_v40 = vpop.permute.xlu0 %234 }
 0x218   : > { %v237_v41 = vmul.f32 %v235_v40, %v458_v0 }
 0x21a   : > { %239 = vrot.lane.b32.xlu0 %v237_v41, %s416_s20 }
 0x28c   : > { %v240_v43 = vpop.permute.xlu0 %239 }
 0x28d   : > { %v242_v44 = vmul.f32 %v240_v43, %v216_v27 }
 0x28f   : > { %244 = vrot.lane.b32.xlu1 %v242_v44, %s418_s21 }
 0x297   : > { %249 = vperm.xlu1 %380, %v237_v41  }
 0x301   : > { %v245_v46 = vpop.permute.xlu1 %244 }
 0x302   : > { %v247_v47 = vsub.f32 %v458_v0, %v245_v46 }
 0x304   : > { %255 = vperm.xlu2 %381, %v247_v47  }
 0x309   : > { %v250_v48 = vpop.permute.xlu1 %249 }
 0x30a   : > { %v252_v49 = vmul.f32 %v250_v48, %v467_v14 }
 0x35e   : > { %v256_v50 = vpop.permute.xlu2 %255 }
 0x35f   : > { %v258_v51 = vadd.f32 %v256_v50, %v252_v49 }
 0x361   : > { %260 = vst.msk [vmem:[%s493_s2] sm:$0x7] %vm259_vm6, %v258_v51 }
 0x362 PF: > { %s12_s11 = sadd.s32 1, %s407_s11   ;;  %s494_s9 = smov %s403_s10 }
 0x363   : > { %p9_p7 = scmp.ge.s32.totalorder %s12_s11, 4   ;;  %s495_s10 = smov %s497_s12 }
 0x365   :  { %11 = sbr.rel (!%p9_p7) target bundleno = 2 (0x2), region = 70 }

</bundles_post_ra>
